<compile_context>
chip_gen: v7x
topology: tpu7x:2x2x1
jax: 0.10.0
libtpu: 0.0.40
codegen_flags: <defaults>
</compile_context>

<pallas_src>
import jax
import jax.numpy as jnp
from jax import lax
from jax.experimental import pallas as pl
from jax.experimental.pallas import tpu as pltpu


def _round_up(x: int, m: int) -> int:
    return ((x + m - 1) // m) * m


def _linear_kernel(xT_ref, w_ref, b_ref, o_ref):
    # xT: [IN, tb] (batch in lanes), w: [OUT, IN], b: [OUT, 1] f32, o: [OUT, tb]
    x = xT_ref[...].astype(jnp.float32)       # [IN, tb]
    w = w_ref[...].astype(jnp.float32)        # [OUT, IN]
    in_dim = w.shape[1]

    # K = N = 10: expand the contraction as IN broadcast-multiply-adds on the
    # VPU, fully lane-parallel over the batch.  A 10x10 matmul would occupy
    # <4% of the 256-wide MXU (v6e/v7x) and just add push/pop latency; the op
    # is DMA-bound either way, so keep the vex/MXU slot free.
    y = b_ref[...]                            # [OUT, 1] -> broadcasts over lanes
    for i in range(in_dim):                   # static, fully unrolled (IN = 10)
        y = y + w[:, i:i + 1] * x[i:i + 1, :]  # [OUT,1]*[1,tb] -> [OUT,tb]

    o_ref[...] = y.astype(o_ref.dtype)        # full-lane-width store


def mock_model_forward(input_ids, weight, bias, *, max_batch_tile=8192,
                       pallas_min_batch=4096, force_pallas=False):
    """logits = input_ids @ weight.T + bias   (nn.Linear(10, 10) semantics)."""
    x = input_ids
    # "input_ids" feeds a float Linear in the reference module; cast integer
    # inputs to the weight dtype.
    if not jnp.issubdtype(x.dtype, jnp.floating):
        x = x.astype(weight.dtype)

    B, IN = x.shape
    OUT = weight.shape[0]
    bias_f32 = bias.astype(jnp.float32)

    # ------------------------------------------------------------------
    # Fast path: below ~pallas_min_batch rows the Pallas call is a single
    # grid step of pure launch/DMA overhead at <1% compute utilization.
    # The fused XLA dot + bias add is strictly faster there.
    # ------------------------------------------------------------------
    if not force_pallas and B < pallas_min_batch:
        y = lax.dot_general(x, weight, (((1,), (1,)), ((), ())),
                            preferred_element_type=jnp.float32)
        return {"logits": (y + bias_f32).astype(x.dtype)}

    # ------------------------------------------------------------------
    # Pallas streaming path (large B): batch-in-lanes layout.
    # One-time layout change in the wrapper; weight/bias stay VMEM-resident,
    # X^T / Y^T tiles stream along the lane (batch) axis.
    # ------------------------------------------------------------------
    xT = x.T                                  # [IN, B]  (batch in lanes)
    bias_col = bias_f32.reshape(OUT, 1)       # [OUT, 1], broadcasts over lanes

    if B <= 256:
        tb = B                                # single full-extent block
    else:
        # >= 2 independent tiles so ("parallel",) can shard across v7x's two
        # TensorCores; multiple of 128 (lane dim); capped so unrolled VPU code
        # and VMEM stay small.  No jnp.pad: partial tail tile is masked.
        tb = min(_round_up(pl.cdiv(B, 2), 128), max_batch_tile)
    grid = (pl.cdiv(B, tb),)

    cost = pl.CostEstimate(
        flops=2 * B * IN * OUT + B * OUT,
        transcendentals=0,
        bytes_accessed=(B * IN * xT.dtype.itemsize          # x read
                        + OUT * IN * weight.dtype.itemsize  # weight read
                        + OUT * 4                           # f32 bias read
                        + B * OUT * xT.dtype.itemsize),     # output write
    )

    logits_T = pl.pallas_call(
        _linear_kernel,
        out_shape=jax.ShapeDtypeStruct((OUT, B), x.dtype),
        grid=grid,
        in_specs=[
            # X^T: streamed per batch (lane) tile.
            pl.BlockSpec((IN, tb), lambda i: (0, i),
                         memory_space=pltpu.MemorySpace.VMEM),
            # weight / bias: whole arrays, resident across all grid steps.
            pl.BlockSpec((OUT, IN), lambda i: (0, 0),
                         memory_space=pltpu.MemorySpace.VMEM),
            pl.BlockSpec((OUT, 1), lambda i: (0, 0),
                         memory_space=pltpu.MemorySpace.VMEM),
        ],
        out_specs=pl.BlockSpec((OUT, tb), lambda i: (0, i),
                               memory_space=pltpu.MemorySpace.VMEM),
        compiler_params=pltpu.CompilerParams(
            # Batch tiles are independent -> shard across v7x's 2 TensorCores.
            dimension_semantics=("parallel",),
        ),
        cost_estimate=cost,
    )(xT, weight, bias_col)

    return {"logits": logits_T.T}             # back to [B, OUT]


if __name__ == "__main__":
    key = jax.random.PRNGKey(0)
    k_x, k_w, k_b = jax.random.split(key, 3)

    B, IN, OUT = 8, 10, 10

    # Deterministic parameter init (nn.Linear shapes: W [10,10], b [10]).
    bound = 1.0 / jnp.sqrt(jnp.float32(IN))
    weight = jax.random.uniform(k_w, (OUT, IN), jnp.float32, -bound, bound)
    bias = jax.random.uniform(k_b, (OUT,), jnp.float32, -bound, bound)

    # "input_ids" feeds straight into a float Linear in the reference module,
    # so it is treated as a float feature tensor of shape [B, 10].
    input_ids = jax.random.normal(k_x, (B, IN), jnp.float32)
    ref = input_ids @ weight.T + bias

    # 1) Default path at the module's tiny shape (XLA fused fast path).
    out = mock_model_forward(input_ids, weight, bias)
    logits = jax.block_until_ready(out["logits"])
    assert logits.shape == (B, OUT)
    assert jnp.allclose(logits, ref, atol=1e-5, rtol=1e-5)

    # 2) Force the Pallas kernel at the same shape (single full-extent tile).
    out_p = mock_model_forward(input_ids, weight, bias, force_pallas=True)
    logits_p = jax.block_until_ready(out_p["logits"])
    assert logits_p.shape == (B, OUT)
    assert jnp.allclose(logits_p, ref, atol=1e-5, rtol=1e-5)

    # 3) Pallas path with a multi-tile grid and a partial (masked) tail tile:
    #    B=300 -> tb=256, grid=(2,).
    B2 = 300
    x2 = jax.random.normal(k_x, (B2, IN), jnp.float32)
    ref2 = x2 @ weight.T + bias
    out2 = mock_model_forward(x2, weight, bias, force_pallas=True)
    logits2 = jax.block_until_ready(out2["logits"])
    assert logits2.shape == (B2, OUT)
    assert jnp.allclose(logits2, ref2, atol=1e-5, rtol=1e-5)

    print("KERNEL_OK")
</pallas_src>

<mosaic_0001>
module attributes {stable_mosaic.version = 11 : i64} {
  func.func @_linear_kernel(%arg0: i32, %arg1: memref<10x8xf32, #tpu.memory_space<vmem>>, %arg2: memref<10x10xf32, #tpu.memory_space<vmem>>, %arg3: memref<10x1xf32, #tpu.memory_space<vmem>>, %arg4: memref<10x8xf32, #tpu.memory_space<vmem>>) attributes {dimension_semantics = [#tpu.dimension_semantics<parallel>], iteration_bounds = array<i64: 1>, scalar_prefetch = 0 : i64, scratch_operands = 0 : i64, tpu.core_type = #tpu.core_type<tc>, window_params = [{transform_indices = @transform_0, window_bounds = array<i64: 10, 8>}, {pipeline_mode = #tpu.pipeline_mode<synchronous>, transform_indices = @transform_1, window_bounds = array<i64: 10, 10>}, {pipeline_mode = #tpu.pipeline_mode<synchronous>, transform_indices = @transform_2, window_bounds = array<i64: 10, 1>}, {transform_indices = @transform_3, window_bounds = array<i64: 10, 8>}]} {
    %c0 = arith.constant 0 : index
    %c0_0 = arith.constant 0 : index
    %0 = vector.load %arg1[%c0, %c0_0] : memref<10x8xf32, #tpu.memory_space<vmem>>, vector<10x8xf32>
    %c0_1 = arith.constant 0 : index
    %c0_2 = arith.constant 0 : index
    %1 = vector.load %arg2[%c0_1, %c0_2] : memref<10x10xf32, #tpu.memory_space<vmem>>, vector<10x10xf32>
    %c0_3 = arith.constant 0 : index
    %c0_4 = arith.constant 0 : index
    %2 = vector.load %arg3[%c0_3, %c0_4] : memref<10x1xf32, #tpu.memory_space<vmem>>, vector<10x1xf32>
    %3 = vector.extract_strided_slice %1 {offsets = [0, 0], sizes = [10, 1], strides = [1, 1]} : vector<10x10xf32> to vector<10x1xf32>
    %4 = vector.extract_strided_slice %0 {offsets = [0, 0], sizes = [1, 8], strides = [1, 1]} : vector<10x8xf32> to vector<1x8xf32>
    %5 = vector.broadcast %3 : vector<10x1xf32> to vector<10x8xf32>
    %6 = vector.broadcast %4 : vector<1x8xf32> to vector<10x8xf32>
    %7 = arith.mulf %5, %6 : vector<10x8xf32>
    %8 = vector.broadcast %2 : vector<10x1xf32> to vector<10x8xf32>
    %9 = arith.addf %8, %7 : vector<10x8xf32>
    %10 = vector.extract_strided_slice %1 {offsets = [0, 1], sizes = [10, 1], strides = [1, 1]} : vector<10x10xf32> to vector<10x1xf32>
    %11 = vector.extract_strided_slice %0 {offsets = [1, 0], sizes = [1, 8], strides = [1, 1]} : vector<10x8xf32> to vector<1x8xf32>
    %12 = vector.broadcast %10 : vector<10x1xf32> to vector<10x8xf32>
    %13 = vector.broadcast %11 : vector<1x8xf32> to vector<10x8xf32>
    %14 = arith.mulf %12, %13 : vector<10x8xf32>
    %15 = arith.addf %9, %14 : vector<10x8xf32>
    %16 = vector.extract_strided_slice %1 {offsets = [0, 2], sizes = [10, 1], strides = [1, 1]} : vector<10x10xf32> to vector<10x1xf32>
    %17 = vector.extract_strided_slice %0 {offsets = [2, 0], sizes = [1, 8], strides = [1, 1]} : vector<10x8xf32> to vector<1x8xf32>
    %18 = vector.broadcast %16 : vector<10x1xf32> to vector<10x8xf32>
    %19 = vector.broadcast %17 : vector<1x8xf32> to vector<10x8xf32>
    %20 = arith.mulf %18, %19 : vector<10x8xf32>
    %21 = arith.addf %15, %20 : vector<10x8xf32>
    %22 = vector.extract_strided_slice %1 {offsets = [0, 3], sizes = [10, 1], strides = [1, 1]} : vector<10x10xf32> to vector<10x1xf32>
    %23 = vector.extract_strided_slice %0 {offsets = [3, 0], sizes = [1, 8], strides = [1, 1]} : vector<10x8xf32> to vector<1x8xf32>
    %24 = vector.broadcast %22 : vector<10x1xf32> to vector<10x8xf32>
    %25 = vector.broadcast %23 : vector<1x8xf32> to vector<10x8xf32>
    %26 = arith.mulf %24, %25 : vector<10x8xf32>
    %27 = arith.addf %21, %26 : vector<10x8xf32>
    %28 = vector.extract_strided_slice %1 {offsets = [0, 4], sizes = [10, 1], strides = [1, 1]} : vector<10x10xf32> to vector<10x1xf32>
    %29 = vector.extract_strided_slice %0 {offsets = [4, 0], sizes = [1, 8], strides = [1, 1]} : vector<10x8xf32> to vector<1x8xf32>
    %30 = vector.broadcast %28 : vector<10x1xf32> to vector<10x8xf32>
    %31 = vector.broadcast %29 : vector<1x8xf32> to vector<10x8xf32>
    %32 = arith.mulf %30, %31 : vector<10x8xf32>
    %33 = arith.addf %27, %32 : vector<10x8xf32>
    %34 = vector.extract_strided_slice %1 {offsets = [0, 5], sizes = [10, 1], strides = [1, 1]} : vector<10x10xf32> to vector<10x1xf32>
    %35 = vector.extract_strided_slice %0 {offsets = [5, 0], sizes = [1, 8], strides = [1, 1]} : vector<10x8xf32> to vector<1x8xf32>
    %36 = vector.broadcast %34 : vector<10x1xf32> to vector<10x8xf32>
    %37 = vector.broadcast %35 : vector<1x8xf32> to vector<10x8xf32>
    %38 = arith.mulf %36, %37 : vector<10x8xf32>
    %39 = arith.addf %33, %38 : vector<10x8xf32>
    %40 = vector.extract_strided_slice %1 {offsets = [0, 6], sizes = [10, 1], strides = [1, 1]} : vector<10x10xf32> to vector<10x1xf32>
    %41 = vector.extract_strided_slice %0 {offsets = [6, 0], sizes = [1, 8], strides = [1, 1]} : vector<10x8xf32> to vector<1x8xf32>
    %42 = vector.broadcast %40 : vector<10x1xf32> to vector<10x8xf32>
    %43 = vector.broadcast %41 : vector<1x8xf32> to vector<10x8xf32>
    %44 = arith.mulf %42, %43 : vector<10x8xf32>
    %45 = arith.addf %39, %44 : vector<10x8xf32>
    %46 = vector.extract_strided_slice %1 {offsets = [0, 7], sizes = [10, 1], strides = [1, 1]} : vector<10x10xf32> to vector<10x1xf32>
    %47 = vector.extract_strided_slice %0 {offsets = [7, 0], sizes = [1, 8], strides = [1, 1]} : vector<10x8xf32> to vector<1x8xf32>
    %48 = vector.broadcast %46 : vector<10x1xf32> to vector<10x8xf32>
    %49 = vector.broadcast %47 : vector<1x8xf32> to vector<10x8xf32>
    %50 = arith.mulf %48, %49 : vector<10x8xf32>
    %51 = arith.addf %45, %50 : vector<10x8xf32>
    %52 = vector.extract_strided_slice %1 {offsets = [0, 8], sizes = [10, 1], strides = [1, 1]} : vector<10x10xf32> to vector<10x1xf32>
    %53 = vector.extract_strided_slice %0 {offsets = [8, 0], sizes = [1, 8], strides = [1, 1]} : vector<10x8xf32> to vector<1x8xf32>
    %54 = vector.broadcast %52 : vector<10x1xf32> to vector<10x8xf32>
    %55 = vector.broadcast %53 : vector<1x8xf32> to vector<10x8xf32>
    %56 = arith.mulf %54, %55 : vector<10x8xf32>
    %57 = arith.addf %51, %56 : vector<10x8xf32>
    %58 = vector.extract_strided_slice %1 {offsets = [0, 9], sizes = [10, 1], strides = [1, 1]} : vector<10x10xf32> to vector<10x1xf32>
    %59 = vector.extract_strided_slice %0 {offsets = [9, 0], sizes = [1, 8], strides = [1, 1]} : vector<10x8xf32> to vector<1x8xf32>
    %60 = vector.broadcast %58 : vector<10x1xf32> to vector<10x8xf32>
    %61 = vector.broadcast %59 : vector<1x8xf32> to vector<10x8xf32>
    %62 = arith.mulf %60, %61 : vector<10x8xf32>
    %63 = arith.addf %57, %62 : vector<10x8xf32>
    %c0_5 = arith.constant 0 : index
    %c0_6 = arith.constant 0 : index
    %64 = vector.load %arg4[%c0_5, %c0_6] : memref<10x8xf32, #tpu.memory_space<vmem>>, vector<10x8xf32>
    tpu.vector_store %arg4[%c0_5, %c0_6], %63 {strides = array<i32>} : memref<10x8xf32, #tpu.memory_space<vmem>>, vector<10x8xf32>,
    return
  }
  func.func @transform_0(%arg0: i32) -> (i32, i32) {
    %c0_i32 = arith.constant 0 : i32
    %c0_i32_0 = arith.constant 0 : i32
    return %c0_i32, %arg0 : i32, i32
  }
  func.func @transform_1(%arg0: i32) -> (i32, i32) {
    %c0_i32 = arith.constant 0 : i32
    %c0_i32_0 = arith.constant 0 : i32
    %c0_i32_1 = arith.constant 0 : i32
    return %c0_i32, %c0_i32_0 : i32, i32
  }
  func.func @transform_2(%arg0: i32) -> (i32, i32) {
    %c0_i32 = arith.constant 0 : i32
    %c0_i32_0 = arith.constant 0 : i32
    %c0_i32_1 = arith.constant 0 : i32
    return %c0_i32, %c0_i32_0 : i32, i32
  }
  func.func @transform_3(%arg0: i32) -> (i32, i32) {
    %c0_i32 = arith.constant 0 : i32
    %c0_i32_0 = arith.constant 0 : i32
    return %c0_i32, %arg0 : i32, i32
  }
}

</mosaic_0001>

<bundles_post_ra>
// kernel: tpu_custom_call.1
= control target key start
LH: loop header
LB: loop body
LE: loop exit
PB: predicated region body
PF: predicated region fallthrough
CT: control target
= control target key end

     0   :  { %v228_v0 = vmov 0   ;;  %v229_v5 = vmov 1   ;;  %v230_v6 = vmov 2   ;;  %v231_v7 = vmov 3   ;;  %s292_s2 = inlined_call_operand.vmem [shape: f32[10,1], index: 2, kind: input, shape index: {}]   ;;  %s293_s1 = inlined_call_operand.vmem [shape: f32[10,10], index: 1, kind: input, shape index: {}]   ;;  %s294_s0 = inlined_call_operand.vmem [shape: f32[10,8], index: 0, kind: input, shape index: {}]   ;;  %s295_s3 = inlined_call_operand.vmem [shape: f32[10,8], index: 3, kind: output, shape index: {}]  }
   0x1   :  { %211 = vset.pattern.permute.xlu1 %v228_v0  ;;  %210 = vset.pattern.permute.xlu0 %v228_v0  ;;  %v18_v1 = vld [vmem:[%s292_s2] sm:$0xff]  ;;  %v19_v3 = vld [vmem:[%s292_s2 + $0x8] sm:$0x3]  ;;  %v232_v8 = vmov 4   ;;  %v233_v9 = vmov 5   ;;  %v234_v10 = vmov 7   ;;  %v30_v18 = vlaneseq }
   0x2   :  { %v16_v2 = vld [vmem:[%s293_s1] sm:$0xff]  ;;  %38 = vperm.xlu1 %211, %v18_v1   ;;  %v17_v4 = vld [vmem:[%s293_s1 + $0x8] sm:$0x3]  ;;  %v235_v11 = vmov 8   ;;  %v236_v12 = vmov 6   ;;  %v237_v13 = vmov 9  }
   0x3   :  { %22 = vperm.xlu0 %210, %v16_v2   ;;  %v270_v21 = vshrl.u32 %v30_v18, 7  ;;  %v14_v25 = vld [vmem:[%s294_s0] sm:$0xff]  ;;  %vm192_vm0 = vcmask 64512   ;;  %vm194_vm1 = vcmask 58368  }
   0x5   :  { %v32_v24 = vsub.s32 0, %v270_v21  ;;  %v58_v26 = vsub.s32 1, %v270_v21  ;;  %v74_v29 = vsub.s32 2, %v270_v21  ;;  %v90_v32 = vsub.s32 3, %v270_v21 }
   0x6   :  { %43 = vperm.xlu1 %211, %v19_v3   ;;  %v106_v38 = vsub.s32 4, %v270_v21  ;;  %v122_v44 = vsub.s32 5, %v270_v21  ;;  %v138_v45 = vsub.s32 6, %v270_v21  ;;  %v154_v57 = vsub.s32 7, %v270_v21 }
   0x7   :  { %27 = vperm.xlu0 %210, %v17_v4   ;;  %v33_v28 = vrot.slane %v14_v25, %v32_v24  ;;  %v59_v31 = vrot.slane %v14_v25, %v58_v26  ;;  %v75_v35 = vrot.slane %v14_v25, %v74_v29  ;;  %v91_v37 = vrot.slane %v14_v25, %v90_v32 }
   0x8   :  { %v107_v49 = vrot.slane %v14_v25, %v106_v38  ;;  %v123_v55 = vrot.slane %v14_v25, %v122_v44  ;;  %v139_v56 = vrot.slane %v14_v25, %v138_v45 }
   0xa   :  { %213 = vset.pattern.permute.xlu1 %v229_v5 }
   0xb   :  { %212 = vset.pattern.permute.xlu0 %v229_v5  ;;  %53 = vperm.xlu1 %213, %v17_v4  }
   0xc   :  { %49 = vperm.xlu0 %212, %v16_v2  }
   0xf   :  { %214 = vset.pattern.permute.xlu1 %v230_v6 }
  0x10   :  { %215 = vset.pattern.permute.xlu0 %v230_v6  ;;  %65 = vperm.xlu1 %214, %v16_v2   ;;  %v155_v6 = vrot.slane %v14_v25, %v154_v57 }
  0x11   :  { %69 = vperm.xlu0 %215, %v17_v4  }
  0x14   :  { %216 = vset.pattern.permute.xlu1 %v231_v7 }
  0x15   :  { %217 = vset.pattern.permute.xlu0 %v232_v8  ;;  %81 = vperm.xlu1 %216, %v16_v2  }
  0x16   :  { %97 = vperm.xlu0 %217, %v16_v2  }
  0x19   :  { %85 = vperm.xlu1 %216, %v17_v4  }
  0x1a   :  { %220 = vset.pattern.permute.xlu0 %v233_v9 }
  0x1b   :  { %117 = vperm.xlu0 %220, %v17_v4  }
  0x1d   :  { %218 = vset.pattern.permute.xlu1 %v232_v8  ;;  %v15_v8 = vld [vmem:[%s294_s0 + $0x8] sm:$0x3] }
  0x1e   :  { %101 = vperm.xlu1 %218, %v17_v4  }
  0x1f   :  { %222 = vset.pattern.permute.xlu0 %v234_v10 }
  0x20   :  { %145 = vperm.xlu0 %222, %v16_v2  }
  0x22   :  { %219 = vset.pattern.permute.xlu1 %v233_v9 }
  0x23   :  { %113 = vperm.xlu1 %219, %v16_v2  }
  0x24   :  { %225 = vset.pattern.permute.xlu0 %v235_v11 }
  0x25   :  { %165 = vperm.xlu0 %225, %v17_v4  }
  0x27   :  { %221 = vset.pattern.permute.xlu1 %v236_v12 }
  0x28   :  { %129 = vperm.xlu1 %221, %v16_v2  }
  0x29   :  { %227 = vset.pattern.permute.xlu0 %v237_v13 }
  0x2c   :  { %133 = vperm.xlu1 %221, %v17_v4  }
  0x30   :  { %223 = vset.pattern.permute.xlu1 %v234_v10 }
  0x31   :  { %149 = vperm.xlu1 %223, %v17_v4  }
  0x35   :  { %224 = vset.pattern.permute.xlu1 %v235_v11 }
  0x36   :  { %161 = vperm.xlu1 %224, %v16_v2  }
  0x3a   :  { %226 = vset.pattern.permute.xlu1 %v237_v13 }
  0x3b   :  { %177 = vperm.xlu1 %226, %v16_v2  }
  0x3f   :  { %181 = vperm.xlu1 %226, %v17_v4  }
  0x81   :  { %v39_v14 = vpop.permute.xlu1 %38 }
  0x82   :  { %v23_v19 = vpop.permute.xlu0 %22 }
  0x83   :  { %v34_v34 = vmul.f32 %v33_v28, %v23_v19 }
  0x85   :  { %v44_v15 = vpop.permute.xlu1 %43  ;;  %v46_v40 = vadd.f32 %v39_v14, %v34_v34 }
  0x86   :  { %v28_v23 = vpop.permute.xlu0 %27 }
  0x87   :  { %v35_v41 = vmul.f32 %v33_v28, %v28_v23 }
  0x89   :  { %v47_v51 = vadd.f32 %v44_v15, %v35_v41  ;;  %v171_v15 = vrot.slane %v15_v8, %v32_v24 }
  0x8a   :  { %v54_v16 = vpop.permute.xlu1 %53 }
  0x8b   :  { %v50_v30 = vpop.permute.xlu0 %49  ;;  %v61_v46 = vmul.f32 %v59_v31, %v54_v16 }
  0x8c   :  { %v60_v36 = vmul.f32 %v59_v31, %v50_v30 }
  0x8d   :  { %v63_v58 = vadd.f32 %v61_v46, %v47_v51 }
  0x8e   :  { %v62_v47 = vadd.f32 %v60_v36, %v46_v40 }
  0x8f   :  { %v66_v17 = vpop.permute.xlu1 %65 }
  0x90   :  { %v70_v39 = vpop.permute.xlu0 %69  ;;  %v76_v42 = vmul.f32 %v75_v35, %v66_v17 }
  0x91   :  { %v77_v53 = vmul.f32 %v75_v35, %v70_v39 }
  0x92   :  { %v78_v52 = vadd.f32 %v76_v42, %v62_v47 }
  0x93   :  { %v79_v63 = vadd.f32 %v77_v53, %v63_v58 }
  0x94   :  { %v82_v20 = vpop.permute.xlu1 %81 }
  0x95   :  { %v92_v48 = vmul.f32 %v91_v37, %v82_v20  ;;  %v98_v50 = vpop.permute.xlu0 %97  ;;  %v187_v20 = vrot.slane %v15_v8, %v58_v26 }
  0x96   :  { %v108_v60 = vmul.f32 %v107_v49, %v98_v50 }
  0x97   :  { %v94_v59 = vadd.f32 %v92_v48, %v78_v52 }
  0x98   :  { %v86_v22 = vpop.permute.xlu1 %85 }
  0x99   :  { %v93_v61 = vmul.f32 %v91_v37, %v86_v22  ;;  %v110_v3 = vadd.f32 %v108_v60, %v94_v59 }
  0x9a   :  { %v118_v62 = vpop.permute.xlu0 %117 }
  0x9b   :  { %v95_v4 = vadd.f32 %v93_v61, %v79_v63  ;;  %v125_v10 = vmul.f32 %v123_v55, %v118_v62 }
  0x9d   :  { %v102_v27 = vpop.permute.xlu1 %101 }
  0x9e   :  { %v109_v0 = vmul.f32 %v107_v49, %v102_v27 }
  0x9f   :  { %v146_v7 = vpop.permute.xlu0 %145 }
  0xa0   :  { %v111_v9 = vadd.f32 %v109_v0, %v95_v4  ;;  %v156_v13 = vmul.f32 %v155_v6, %v146_v7 }
  0xa2   :  { %v114_v33 = vpop.permute.xlu1 %113  ;;  %v127_v17 = vadd.f32 %v125_v10, %v111_v9 }
  0xa3   :  { %v124_v1 = vmul.f32 %v123_v55, %v114_v33 }
  0xa4   :  { %v166_v21 = vpop.permute.xlu0 %165 }
  0xa5   :  { %v126_v11 = vadd.f32 %v124_v1, %v110_v3  ;;  %v173_v28 = vmul.f32 %v171_v15, %v166_v21 }
  0xa7   :  { %v130_v43 = vpop.permute.xlu1 %129 }
  0xa8   :  { %v140_v5 = vmul.f32 %v139_v56, %v130_v43 }
  0xaa   :  { %v142_v12 = vadd.f32 %v140_v5, %v126_v11 }
  0xab   :  { %v134_v54 = vpop.permute.xlu1 %133 }
  0xac   :  { %v141_v14 = vmul.f32 %v139_v56, %v134_v54  ;;  %v158_v22 = vadd.f32 %v156_v13, %v142_v12 }
  0xae   :  { %v143_v23 = vadd.f32 %v141_v14, %v127_v17 }
  0xb0   :  { %v150_v2 = vpop.permute.xlu1 %149 }
  0xb1   :  { %v157_v18 = vmul.f32 %v155_v6, %v150_v2 }
  0xb3   :  { %v159_v27 = vadd.f32 %v157_v18, %v143_v23 }
  0xb5   :  { %v162_v16 = vpop.permute.xlu1 %161  ;;  %v175_v33 = vadd.f32 %v173_v28, %v159_v27 }
  0xb6   :  { %v172_v19 = vmul.f32 %v171_v15, %v162_v16 }
  0xb8   :  { %v174_v29 = vadd.f32 %v172_v19, %v158_v22 }
  0xba   :  { %v178_v25 = vpop.permute.xlu1 %177 }
  0xbb   :  { %v188_v30 = vmul.f32 %v187_v20, %v178_v25 }
  0xbd   :  { %v190_v31 = vadd.f32 %v188_v30, %v174_v29 }
  0xbe   :  { %v182_v32 = vpop.permute.xlu1 %181 }
  0xbf   :  { %193 = vst.msk [vmem:[%s295_s3] sm:$0xff] %vm192_vm0, %v190_v31  ;;  %v189_v24 = vmul.f32 %v187_v20, %v182_v32 }
  0xc1   :  { %v191_v34 = vadd.f32 %v189_v24, %v175_v33 }
  0xc3   :  { %195 = vst.msk [vmem:[%s295_s3 + $0x8] sm:$0x3] %vm194_vm1, %v191_v34 }

</bundles_post_ra>
